<compile_context>
chip_gen: v5e
topology: v5e:2x2
jax: 0.10.0
libtpu: 0.0.40
codegen_flags: <defaults>
</compile_context>

<pallas_src>
import functools

import jax
import jax.numpy as jnp
from jax.experimental import pallas as pl
from jax.experimental.pallas import tpu as pltpu


def _boost_rnn_kernel(ids_ref, fused_ref, whh_ref, wout_ref, bout_ref,
                      logit_ref, *, batch, seq):
    """Single-invocation fused forward pass.

    ids_ref  : (S*B, 1) int32  time-major flattened token ids (row t*B+b = x[b,t])
    fused_ref: (Vpad, H) f32   embed_pad @ Wxh + bh  (bias pre-folded)
    whh_ref  : (H, H)
    wout_ref : (H, C)
    bout_ref : (1, C)
    logit_ref: (B, C)  output
    """
    B, S = batch, seq
    SB = S * B
    Vp = fused_ref.shape[0]
    H = whh_ref.shape[0]

    # ---- Embedding gather + input projection as ONE one-hot matmul ----------
    # xp[t*B+b, :] = embed[x[b,t]] @ Wxh + bh   (bh folds in: one-hot rows sum to 1)
    ids = ids_ref[...]                                                # (SB, 1)
    onehot = (jax.lax.broadcasted_iota(jnp.int32, (SB, Vp), 1) == ids
              ).astype(jnp.float32)                                   # (SB, Vp)
    xp = jnp.dot(onehot, fused_ref[...],
                 preferred_element_type=jnp.float32)                  # (SB, H)

    whh = whh_ref[...]

    # ---- Recurrence: only h @ Whh + add + tanh sits on the serial chain -----
    # S is tiny -> static Python unroll; slices of the vreg-resident `xp` value
    # are static and sublane-aligned (B == 8 == f32 sublane count).
    h = jnp.zeros((B, H), jnp.float32)
    for t in range(S):
        pre = xp[t * B:(t + 1) * B, :] + jnp.dot(
            h, whh, preferred_element_type=jnp.float32)
        h = jnp.tanh(pre)

    # (B, C) with C << 128 is a masked store, but it is written exactly once.
    logit_ref[...] = (jnp.dot(h, wout_ref[...],
                              preferred_element_type=jnp.float32)
                      + bout_ref[...]).astype(logit_ref.dtype)


@jax.jit
def boost_forward_pallas(x_ids, fused, whh, wout, bout):
    """x_ids: (B, S) int32 token ids.  Returns logits (B, num_classes) f32."""
    B, S = x_ids.shape
    Vp, H = fused.shape
    C = wout.shape[1]

    # Tiny (B, S) int32 -> time-major flattened column (row t*B+b = x[b, t]).
    # Under the enclosing jit this fuses into the same XLA program as the
    # pallas_call (single dispatch).
    ids_tm = jnp.transpose(x_ids.astype(jnp.int32), (1, 0)).reshape(S * B, 1)

    kernel = functools.partial(_boost_rnn_kernel, batch=B, seq=S)
    vmem_spec = pl.BlockSpec(memory_space=pltpu.MemorySpace.VMEM)

    cost = pl.CostEstimate(
        flops=2 * S * B * Vp * H + 2 * S * B * H * H + 2 * B * H * C,
        transcendentals=S * B * H,
        bytes_accessed=4 * (S * B + Vp * H + H * H + H * C + C + B * C),
    )

    return pl.pallas_call(
        kernel,
        out_shape=jax.ShapeDtypeStruct((B, C), jnp.float32),
        in_specs=[vmem_spec] * 5,
        out_specs=vmem_spec,
        cost_estimate=cost,
    )(ids_tm, fused, whh, wout, bout)


class BoostPallas:
    """Mirror of Boost: holds one inner RNN model and forwards (x, y) -> logits."""

    def __init__(self, embed_mat, hidden_dim=32, num_classes=4, seed=0):
        vocab, embed_dim = embed_mat.shape
        self.embed_mat = jnp.asarray(embed_mat, jnp.float32)

        k = jax.random.PRNGKey(seed)
        k1, k2, k3, _ = jax.random.split(k, 4)
        scale_in = 1.0 / jnp.sqrt(embed_dim)
        scale_h = 1.0 / jnp.sqrt(hidden_dim)
        # TODO(synk): Boost loads pretrained RNN weights from opt['model_dir'];
        # here params are synthetic/deterministic (no checkpoint loading).
        self.wxh = (jax.random.normal(k1, (embed_dim, hidden_dim), jnp.float32)
                    * scale_in)
        self.whh = (jax.random.normal(k2, (hidden_dim, hidden_dim), jnp.float32)
                    * scale_h)
        self.bh = jnp.zeros((1, hidden_dim), jnp.float32)
        self.wout = (jax.random.normal(k3, (hidden_dim, num_classes), jnp.float32)
                     * scale_h)
        self.bout = jnp.zeros((1, num_classes), jnp.float32)

        # Pad vocab rows to a lane multiple (128) and fold Wxh + bh into the
        # table once at init: fused[v] = embed[v] @ Wxh + bh.  Padded rows
        # evaluate to bh, matching the previous zero-embedding behavior.
        vpad = ((vocab + 127) // 128) * 128
        embed_pad = jnp.zeros((vpad, embed_dim), jnp.float32).at[:vocab].set(
            self.embed_mat)
        self.fused = embed_pad @ self.wxh + self.bh                   # (Vpad, H)

    def __call__(self, x_ids, y=None):
        # NOTE: ids are assumed in [0, vocab); out-of-range ids select the
        # bias-only padded row rather than raising like torch's embedding.
        return boost_forward_pallas(x_ids, self.fused, self.whh,
                                    self.wout, self.bout)


def _reference_forward(model, x_ids):
    """Pure-JAX reference of the same RNN for a sanity check."""
    x_emb = jnp.take(model.embed_mat, x_ids, axis=0).astype(jnp.float32)
    B, S, _ = x_emb.shape
    h = jnp.zeros((B, model.whh.shape[0]), jnp.float32)
    for t in range(S):
        h = jnp.tanh(x_emb[:, t, :] @ model.wxh + h @ model.whh + model.bh)
    return h @ model.wout + model.bout


if __name__ == "__main__":
    key = jax.random.PRNGKey(0)
    k_emb, k_x, k_y = jax.random.split(key, 3)

    vocab, embed_dim = 50, 32
    batch, seq = 8, 8
    num_classes = 4

    embed_mat = jax.random.normal(k_emb, (vocab, embed_dim), jnp.float32) * 0.1
    x = jax.random.randint(k_x, (batch, seq), 0, vocab, dtype=jnp.int32)
    y = jax.random.randint(k_y, (batch,), 0, num_classes, dtype=jnp.int32)

    model = BoostPallas(embed_mat, hidden_dim=32, num_classes=num_classes, seed=0)

    logits = model(x, y)
    logits = jax.block_until_ready(logits)

    ref = _reference_forward(model, x)
    assert logits.shape == (batch, num_classes)
    assert jnp.allclose(logits, ref, atol=1e-4, rtol=1e-4), "mismatch vs reference"

    print("KERNEL_OK")
</pallas_src>

<mosaic_0001>
module attributes {stable_mosaic.version = 11 : i64} {
  func.func @_boost_rnn_kernel(%arg0: memref<64x1xi32, #tpu.memory_space<vmem>>, %arg1: memref<128x32xf32, #tpu.memory_space<vmem>>, %arg2: memref<32x32xf32, #tpu.memory_space<vmem>>, %arg3: memref<32x4xf32, #tpu.memory_space<vmem>>, %arg4: memref<1x4xf32, #tpu.memory_space<vmem>>, %arg5: memref<8x4xf32, #tpu.memory_space<vmem>>) attributes {dimension_semantics = [], scalar_prefetch = 0 : i64, scratch_operands = 0 : i64, tpu.core_type = #tpu.core_type<tc>} {
    %c0 = arith.constant 0 : index
    %c0_0 = arith.constant 0 : index
    %0 = vector.load %arg0[%c0, %c0_0] : memref<64x1xi32, #tpu.memory_space<vmem>>, vector<64x1xi32>
    %1 = tpu.iota {dimensions = array<i32: 1>} : vector<64x128xi32>
    %2 = vector.broadcast %0 : vector<64x1xi32> to vector<64x128xi32>
    %3 = arith.cmpi eq, %1, %2 : vector<64x128xi32>
    %4 = arith.extui %3 : vector<64x128xi1> to vector<64x128xi32>
    %5 = arith.sitofp %4 : vector<64x128xi32> to vector<64x128xf32>
    %c0_1 = arith.constant 0 : index
    %c0_2 = arith.constant 0 : index
    %6 = vector.load %arg1[%c0_1, %c0_2] : memref<128x32xf32, #tpu.memory_space<vmem>>, vector<128x32xf32>
    %cst = arith.constant dense<0.000000e+00> : vector<64x32xf32>
    %7 = tpu.matmul %5, %6, %cst {dimension_numbers = #tpu.dot_dimension_numbers<[1], [0], [0], [1], [0, 0, 1, 1], [], []>} : vector<64x128xf32>, vector<128x32xf32>, vector<64x32xf32> -> vector<64x32xf32>
    %c0_3 = arith.constant 0 : index
    %c0_4 = arith.constant 0 : index
    %8 = vector.load %arg2[%c0_3, %c0_4] : memref<32x32xf32, #tpu.memory_space<vmem>>, vector<32x32xf32>
    %cst_5 = arith.constant 0.000000e+00 : f32
    %9 = vector.broadcast %cst_5 : f32 to vector<8x32xf32>
    %10 = vector.extract_strided_slice %7 {offsets = [0, 0], sizes = [8, 32], strides = [1, 1]} : vector<64x32xf32> to vector<8x32xf32>
    %cst_6 = arith.constant dense<0.000000e+00> : vector<8x32xf32>
    %11 = tpu.matmul %9, %8, %cst_6 {dimension_numbers = #tpu.dot_dimension_numbers<[1], [0], [0], [1], [0, 0, 1, 1], [], []>} : vector<8x32xf32>, vector<32x32xf32>, vector<8x32xf32> -> vector<8x32xf32>
    %12 = arith.addf %10, %11 : vector<8x32xf32>
    %13 = math.tanh %12 : vector<8x32xf32>
    %14 = vector.extract_strided_slice %7 {offsets = [8, 0], sizes = [8, 32], strides = [1, 1]} : vector<64x32xf32> to vector<8x32xf32>
    %cst_7 = arith.constant dense<0.000000e+00> : vector<8x32xf32>
    %15 = tpu.matmul %13, %8, %cst_7 {dimension_numbers = #tpu.dot_dimension_numbers<[1], [0], [0], [1], [0, 0, 1, 1], [], []>} : vector<8x32xf32>, vector<32x32xf32>, vector<8x32xf32> -> vector<8x32xf32>
    %16 = arith.addf %14, %15 : vector<8x32xf32>
    %17 = math.tanh %16 : vector<8x32xf32>
    %18 = vector.extract_strided_slice %7 {offsets = [16, 0], sizes = [8, 32], strides = [1, 1]} : vector<64x32xf32> to vector<8x32xf32>
    %cst_8 = arith.constant dense<0.000000e+00> : vector<8x32xf32>
    %19 = tpu.matmul %17, %8, %cst_8 {dimension_numbers = #tpu.dot_dimension_numbers<[1], [0], [0], [1], [0, 0, 1, 1], [], []>} : vector<8x32xf32>, vector<32x32xf32>, vector<8x32xf32> -> vector<8x32xf32>
    %20 = arith.addf %18, %19 : vector<8x32xf32>
    %21 = math.tanh %20 : vector<8x32xf32>
    %22 = vector.extract_strided_slice %7 {offsets = [24, 0], sizes = [8, 32], strides = [1, 1]} : vector<64x32xf32> to vector<8x32xf32>
    %cst_9 = arith.constant dense<0.000000e+00> : vector<8x32xf32>
    %23 = tpu.matmul %21, %8, %cst_9 {dimension_numbers = #tpu.dot_dimension_numbers<[1], [0], [0], [1], [0, 0, 1, 1], [], []>} : vector<8x32xf32>, vector<32x32xf32>, vector<8x32xf32> -> vector<8x32xf32>
    %24 = arith.addf %22, %23 : vector<8x32xf32>
    %25 = math.tanh %24 : vector<8x32xf32>
    %26 = vector.extract_strided_slice %7 {offsets = [32, 0], sizes = [8, 32], strides = [1, 1]} : vector<64x32xf32> to vector<8x32xf32>
    %cst_10 = arith.constant dense<0.000000e+00> : vector<8x32xf32>
    %27 = tpu.matmul %25, %8, %cst_10 {dimension_numbers = #tpu.dot_dimension_numbers<[1], [0], [0], [1], [0, 0, 1, 1], [], []>} : vector<8x32xf32>, vector<32x32xf32>, vector<8x32xf32> -> vector<8x32xf32>
    %28 = arith.addf %26, %27 : vector<8x32xf32>
    %29 = math.tanh %28 : vector<8x32xf32>
    %30 = vector.extract_strided_slice %7 {offsets = [40, 0], sizes = [8, 32], strides = [1, 1]} : vector<64x32xf32> to vector<8x32xf32>
    %cst_11 = arith.constant dense<0.000000e+00> : vector<8x32xf32>
    %31 = tpu.matmul %29, %8, %cst_11 {dimension_numbers = #tpu.dot_dimension_numbers<[1], [0], [0], [1], [0, 0, 1, 1], [], []>} : vector<8x32xf32>, vector<32x32xf32>, vector<8x32xf32> -> vector<8x32xf32>
    %32 = arith.addf %30, %31 : vector<8x32xf32>
    %33 = math.tanh %32 : vector<8x32xf32>
    %34 = vector.extract_strided_slice %7 {offsets = [48, 0], sizes = [8, 32], strides = [1, 1]} : vector<64x32xf32> to vector<8x32xf32>
    %cst_12 = arith.constant dense<0.000000e+00> : vector<8x32xf32>
    %35 = tpu.matmul %33, %8, %cst_12 {dimension_numbers = #tpu.dot_dimension_numbers<[1], [0], [0], [1], [0, 0, 1, 1], [], []>} : vector<8x32xf32>, vector<32x32xf32>, vector<8x32xf32> -> vector<8x32xf32>
    %36 = arith.addf %34, %35 : vector<8x32xf32>
    %37 = math.tanh %36 : vector<8x32xf32>
    %38 = vector.extract_strided_slice %7 {offsets = [56, 0], sizes = [8, 32], strides = [1, 1]} : vector<64x32xf32> to vector<8x32xf32>
    %cst_13 = arith.constant dense<0.000000e+00> : vector<8x32xf32>
    %39 = tpu.matmul %37, %8, %cst_13 {dimension_numbers = #tpu.dot_dimension_numbers<[1], [0], [0], [1], [0, 0, 1, 1], [], []>} : vector<8x32xf32>, vector<32x32xf32>, vector<8x32xf32> -> vector<8x32xf32>
    %40 = arith.addf %38, %39 : vector<8x32xf32>
    %41 = math.tanh %40 : vector<8x32xf32>
    %c0_14 = arith.constant 0 : index
    %c0_15 = arith.constant 0 : index
    %42 = vector.load %arg3[%c0_14, %c0_15] : memref<32x4xf32, #tpu.memory_space<vmem>>, vector<32x4xf32>
    %cst_16 = arith.constant dense<0.000000e+00> : vector<8x4xf32>
    %43 = tpu.matmul %41, %42, %cst_16 {dimension_numbers = #tpu.dot_dimension_numbers<[1], [0], [0], [1], [0, 0, 1, 1], [], []>} : vector<8x32xf32>, vector<32x4xf32>, vector<8x4xf32> -> vector<8x4xf32>
    %c0_17 = arith.constant 0 : index
    %c0_18 = arith.constant 0 : index
    %44 = vector.load %arg4[%c0_17, %c0_18] : memref<1x4xf32, #tpu.memory_space<vmem>>, vector<1x4xf32>
    %45 = vector.broadcast %44 : vector<1x4xf32> to vector<8x4xf32>
    %46 = arith.addf %43, %45 : vector<8x4xf32>
    %c0_19 = arith.constant 0 : index
    %c0_20 = arith.constant 0 : index
    %47 = vector.load %arg5[%c0_19, %c0_20] : memref<8x4xf32, #tpu.memory_space<vmem>>, vector<8x4xf32>
    tpu.vector_store %arg5[%c0_19, %c0_20], %46 {strides = array<i32>} : memref<8x4xf32, #tpu.memory_space<vmem>>, vector<8x4xf32>,
    return
  }
}

</mosaic_0001>

<bundles_post_ra>
// kernel: boost_forward_pallas.1
= control target key start
LH: loop header
LB: loop body
LE: loop exit
PB: predicated region body
PF: predicated region fallthrough
CT: control target
= control target key end

     0   :  { %v424_v0 = vmov 0   ;;  %v425_v28 = vmov 0.0   ;;  %v28_v29 = vlaneseq  ;;  %v426_v32 = vmov 1.0   ;;  %s597_s0 = inlined_call_operand.vmem [shape: s32[64,1], index: 0, kind: input, shape index: {}]   ;;  %s598_s1 = inlined_call_operand.vmem [shape: f32[128,32], index: 1, kind: input, shape index: {}]   ;;  %s599_s2 = inlined_call_operand.vmem [shape: f32[32,32], index: 2, kind: input, shape index: {}]   ;;  %s600_s4 = inlined_call_operand.vmem [shape: f32[1,4], index: 4, kind: input, shape index: {}]   ;;  %s601_s3 = inlined_call_operand.vmem [shape: f32[32,4], index: 3, kind: input, shape index: {}]   ;;  %s602_s5 = inlined_call_operand.vmem [shape: f32[8,4], index: 5, kind: output, shape index: {}]  }
   0x1   :  { %404 = vset.pattern.permute.xlu0 %v424_v0  ;;  %v20_v1 = vld [vmem:[%s597_s0] sm:$0xff]  ;;  %405 = vset.pattern.permute.xlu1 %v424_v0  ;;  %v22_v2 = vld [vmem:[%s597_s0 + $0x10] sm:$0xff]  ;;  %v93_v4 = vld [vmem:[%s598_s1 + $0x78] sm:$0xff]  ;;  %vm139_vm7 = vcmask 261120   ;;  %vm371_vm9 = vcmask 31744  }
   0x2   :  { %31 = vperm.xlu0 %404, %v20_v1   ;;  %37 = vperm.xlu1 %405, %v22_v2   ;;  %v24_v3 = vld [vmem:[%s597_s0 + $0x20] sm:$0xff]  ;;  %v92_v5 = vld [vmem:[%s598_s1 + $0x70] sm:$0xff]  ;;  %v91_v6 = vld [vmem:[%s598_s1 + $0x68] sm:$0xff]  ;;  %v29_v30 = vand.u32 127, %v28_v29 }
   0x3   :  { %406 = vset.pattern.permute.xlu2 %v424_v0  ;;  %94 = vmatpush.msra.mxu0 %v93_v4  ;;  %v21_v7 = vld [vmem:[%s597_s0 + $0x8] sm:$0xff]  ;;  %v23_v8 = vld [vmem:[%s597_s0 + $0x18] sm:$0xff]  ;;  %v90_v10 = vld [vmem:[%s598_s1 + $0x60] sm:$0xff] }
   0x4   :  { %43 = vperm.xlu2 %406, %v24_v3   ;;  %v484_v9 = vld [vmem:[%s599_s2 + $0x18] sm:$0xff]  ;;  %v493_v11 = vld [vmem:[%s599_s2 + $0x10] sm:$0xff]  ;;  %v25_v12 = vld [vmem:[%s597_s0 + $0x28] sm:$0xff] }
   0x5   :  { %95 = vmatpush.msra.mxu0 %v92_v5  ;;  %155 = vmatpush.msra.mxu1 %v484_v9  ;;  %v89_v13 = vld [vmem:[%s598_s1 + $0x58] sm:$0xff]  ;;  %v506_v14 = vld [vmem:[%s599_s2 + $0x8] sm:$0xff]  ;;  %v88_v15 = vld [vmem:[%s598_s1 + $0x50] sm:$0xff] }
   0x6   :  { %180 = vmatpush.msra.mxu2 %v484_v9  ;;  %205 = vmatpush.msra.mxu3 %v484_v9  ;;  %v87_v16 = vld [vmem:[%s598_s1 + $0x48] sm:$0xff]  ;;  %v26_v17 = vld [vmem:[%s597_s0 + $0x30] sm:$0xff]  ;;  %v86_v18 = vld [vmem:[%s598_s1 + $0x40] sm:$0xff] }
   0x7   :  { %96 = vmatpush.msra.mxu0 %v91_v6  ;;  %156 = vmatpush.msra.mxu1 %v493_v11  ;;  %v85_v19 = vld [vmem:[%s598_s1 + $0x38] sm:$0xff]  ;;  %v84_v20 = vld [vmem:[%s598_s1 + $0x30] sm:$0xff]  ;;  %v83_v21 = vld [vmem:[%s598_s1 + $0x28] sm:$0xff] }
   0x8   :  { %181 = vmatpush.msra.mxu2 %v493_v11  ;;  %206 = vmatpush.msra.mxu3 %v493_v11  ;;  %v82_v22 = vld [vmem:[%s598_s1 + $0x20] sm:$0xff]  ;;  %v81_v23 = vld [vmem:[%s598_s1 + $0x18] sm:$0xff]  ;;  %v80_v24 = vld [vmem:[%s598_s1 + $0x10] sm:$0xff] }
   0x9   :  { %97 = vmatpush.msra.mxu0 %v90_v10  ;;  %157 = vmatpush.msra.mxu1 %v506_v14  ;;  %v79_v25 = vld [vmem:[%s598_s1 + $0x8] sm:$0xff]  ;;  %v78_v26 = vld [vmem:[%s598_s1] sm:$0xff]  ;;  %v27_v42 = vld [vmem:[%s597_s0 + $0x38] sm:$0xff] }
   0xa   :  { %34 = vperm.xlu0 %404, %v21_v7   ;;  %40 = vperm.xlu1 %405, %v23_v8   ;;  %v135_v27 = vld [vmem:[%s599_s2] sm:$0xff]  ;;  %v343_v5 = vld [vmem:[%s601_s3 + $0x18] sm:$0xff]  ;;  %v342_v6 = vld [vmem:[%s601_s3 + $0x10] sm:$0xff] }
   0xb   :  { %98 = vmatpush.msra.mxu0 %v89_v13  ;;  %182 = vmatpush.msra.mxu2 %v506_v14  ;;  %v341_v7 = vld [vmem:[%s601_s3 + $0x8] sm:$0xff]  ;;  %v340_v8 = vld [vmem:[%s601_s3] sm:$0xff] }
   0xc   :  { %46 = vperm.xlu2 %406, %v25_v12   ;;  %207 = vmatpush.msra.mxu3 %v506_v14  ;;  %v407_v13 = vld [vmem:[%s600_s4] ss:$0 sm:$0xff] }
   0xd   :  { %99 = vmatpush.msra.mxu0 %v88_v15  ;;  %158 = vmatpush.msra.mxu1 %v135_v27 }
   0xe   :  { %159 = vmatmul.f32.vlgmr.msra.gmra.mxu1 %v425_v28  ;;  %183 = vmatpush.msra.mxu2 %v135_v27 }
   0xf   :  { %100 = vmatpush.msra.mxu0 %v87_v16  ;;  %208 = vmatpush.msra.mxu3 %v135_v27 }
  0x10   :  { %230 = vmatpush.msrb.mxu1 %v484_v9  ;;  %255 = vmatpush.msrb.mxu2 %v484_v9 }
  0x11   :  { %101 = vmatpush.msra.mxu0 %v86_v18  ;;  %280 = vmatpush.msrb.mxu3 %v484_v9 }
  0x12   :  { %49 = vperm.xlu0 %404, %v26_v17   ;;  %231 = vmatpush.msrb.mxu1 %v493_v11 }
  0x13   :  { %102 = vmatpush.msra.mxu0 %v85_v19  ;;  %256 = vmatpush.msrb.mxu2 %v493_v11 }
  0x14   :  { %281 = vmatpush.msrb.mxu3 %v493_v11  ;;  %232 = vmatpush.msrb.mxu1 %v506_v14 }
  0x15   :  { %103 = vmatpush.msra.mxu0 %v84_v20  ;;  %257 = vmatpush.msrb.mxu2 %v506_v14 }
  0x16   :  { %282 = vmatpush.msrb.mxu3 %v506_v14  ;;  %233 = vmatpush.msrb.mxu1 %v135_v27 }
  0x17   :  { %104 = vmatpush.msra.mxu0 %v83_v21  ;;  %258 = vmatpush.msrb.mxu2 %v135_v27 }
  0x18   :  { %283 = vmatpush.msrb.mxu3 %v135_v27  ;;  %305 = vmatpush.msra.mxu1 %v484_v9 }
  0x19   :  { %105 = vmatpush.msra.mxu0 %v82_v22  ;;  %52 = vperm.xlu1 %405, %v27_v42  }
  0x1a   :  { %306 = vmatpush.msra.mxu1 %v493_v11 }
  0x1b   :  { %106 = vmatpush.msra.mxu0 %v81_v23 }
  0x1c   :  { %307 = vmatpush.msra.mxu1 %v506_v14 }
  0x1d   :  { %107 = vmatpush.msra.mxu0 %v80_v24 }
  0x1e   :  { %308 = vmatpush.msra.mxu1 %v135_v27 }
  0x1f   :  { %108 = vmatpush.msra.mxu0 %v79_v25 }
  0x21   :  { %109 = vmatpush.msra.mxu0 %v78_v26 }
  0x5e   :  { %v44_v36 = vpop.permute.xlu2 %43 }
  0x5f   :  { %vm58_vm4 = vcmp.eq.s32.totalorder %v29_v30, %v44_v36 }
  0x66   :  { %v47_v37 = vpop.permute.xlu2 %46 }
  0x67   :  { %vm59_vm5 = vcmp.eq.s32.totalorder %v29_v30, %v47_v37 }
  0x74   :  { %v32_v31 = vpop.permute.xlu0 %31  ;;  %v38_v34 = vpop.permute.xlu1 %37 }
  0x75   :  { %vm54_vm0 = vcmp.eq.s32.totalorder %v29_v30, %v32_v31  ;;  %vm56_vm2 = vcmp.eq.s32.totalorder %v29_v30, %v38_v34 }
  0x76   :  { %385 = vmatmul.msk.f32.vlgmr.msra.gmra.mxu0 %vm54_vm0, %v426_v32 }
  0x7c   :  { %v35_v33 = vpop.permute.xlu0 %34  ;;  %v41_v35 = vpop.permute.xlu1 %40 }
  0x7d   :  { %vm55_vm1 = vcmp.eq.s32.totalorder %v29_v30, %v35_v33  ;;  %vm57_vm3 = vcmp.eq.s32.totalorder %v29_v30, %v41_v35 }
  0x7e   :  { %386 = vmatmul.msk.f32.gmra.mxu0 %vm55_vm1, %v426_v32 }
  0x84   :  { %v50_v38 = vpop.permute.xlu0 %49 }
  0x85   :  { %vm60_vm6 = vcmp.eq.s32.totalorder %v29_v30, %v50_v38 }
  0x86   :  { %387 = vmatmul.msk.f32.gmra.mxu0 %vm56_vm2, %v426_v32 }
  0x8b   :  { %v160_v39 = vpop.f32.mrf.mxu1  ;;  %v53_v44 = vpop.permute.xlu1 %52 }
  0x8c   :  { %vm61_vm8 = vcmp.eq.s32.totalorder %v29_v30, %v53_v44 }
  0x8e   :  { %388 = vmatmul.msk.f32.gmra.mxu0 %vm57_vm3, %v426_v32 }
  0x96   :  { %389 = vmatmul.msk.f32.gmra.mxu0 %vm58_vm4, %v426_v32 }
  0x9e   :  { %390 = vmatmul.msk.f32.gmra.mxu0 %vm59_vm5, %v426_v32 }
  0xa6   :  { %391 = vmatmul.msk.f32.gmra.mxu0 %vm60_vm6, %v426_v32 }
  0xae   :  { %392 = vmatmul.msk.f32.gmra.mxu0 %vm61_vm8, %v426_v32 }
  0xf3   :  { %v111_v40 = vpop.f32.mrf.mxu0 }
  0xf4   :  { %v163_v41 = vadd.f32 %v160_v39, %v111_v40 }
  0xf6   :  { %408 = vtanh.f32 %v163_v41 }
  0xfb   :  { %v114_v45 = vpop.f32.mrf.mxu0 }
  0xfc   :  { %v409_v43 = vpop.eup %408 }
  0xfd   :  { %393 = vmatmul.msk.f32.vlgmr.msra.gmra.mxu2 %vm139_vm7, %v409_v43 }
  0xfe   :  { %330 = vmatpush.msra.mxu2 %v484_v9 }
 0x100   :  { %331 = vmatpush.msra.mxu2 %v493_v11 }
 0x102   :  { %332 = vmatpush.msra.mxu2 %v506_v14 }
 0x103   :  { %v117_v49 = vpop.f32.mrf.mxu0 }
 0x104   :  { %333 = vmatpush.msra.mxu2 %v135_v27 }
 0x10b   :  { %v120_v53 = vpop.f32.mrf.mxu0 }
 0x113   :  { %v123_v57 = vpop.f32.mrf.mxu0 }
 0x11b   :  { %v126_v61 = vpop.f32.mrf.mxu0 }
 0x123   :  { %v129_v1 = vpop.f32.mrf.mxu0 }
 0x12b   :  { %v132_v9 = vpop.f32.mrf.mxu0 }
 0x180   :  { %v185_v46 = vpop.f32.mrf.mxu2 }
 0x181   :  { %v188_v47 = vadd.f32 %v185_v46, %v114_v45 }
 0x183   :  { %410 = vtanh.f32 %v188_v47 }
 0x189   :  { %v411_v48 = vpop.eup %410 }
 0x18a   :  { %394 = vmatmul.msk.f32.vlgmr.msra.gmra.mxu3 %vm139_vm7, %v411_v48 }
 0x18b   :  { %363 = vmatpush.msra.mxu3 %v343_v5 }
 0x18d   :  { %364 = vmatpush.msra.mxu3 %v342_v6 }
 0x18f   :  { %365 = vmatpush.msra.mxu3 %v341_v7 }
 0x191   :  { %366 = vmatpush.msra.mxu3 %v340_v8 }
 0x20d   :  { %v210_v50 = vpop.f32.mrf.mxu3 }
 0x20e   :  { %v213_v51 = vadd.f32 %v210_v50, %v117_v49 }
 0x210   :  { %412 = vtanh.f32 %v213_v51 }
 0x216   :  { %v413_v52 = vpop.eup %412 }
 0x217   :  { %395 = vmatmul.msk.f32.vlgmr.msrb.gmra.mxu1 %vm139_vm7, %v413_v52 }
 0x294   :  { %v235_v54 = vpop.f32.mrf.mxu1 }
 0x295   :  { %v238_v55 = vadd.f32 %v235_v54, %v120_v53 }
 0x297   :  { %414 = vtanh.f32 %v238_v55 }
 0x29d   :  { %v415_v56 = vpop.eup %414 }
 0x29e   :  { %396 = vmatmul.msk.f32.vlgmr.msrb.gmra.mxu2 %vm139_vm7, %v415_v56 }
 0x321   :  { %v260_v58 = vpop.f32.mrf.mxu2 }
 0x322   :  { %v263_v59 = vadd.f32 %v260_v58, %v123_v57 }
 0x324   :  { %416 = vtanh.f32 %v263_v59 }
 0x32a   :  { %v417_v60 = vpop.eup %416 }
 0x32b   :  { %397 = vmatmul.msk.f32.vlgmr.msrb.gmra.mxu3 %vm139_vm7, %v417_v60 }
 0x3ae   :  { %v285_v62 = vpop.f32.mrf.mxu3 }
 0x3af   :  { %v288_v63 = vadd.f32 %v285_v62, %v126_v61 }
 0x3b1   :  { %418 = vtanh.f32 %v288_v63 }
 0x3b7   :  { %v419_v0 = vpop.eup %418 }
 0x3b8   :  { %398 = vmatmul.msk.f32.vlgmr.msra.gmra.mxu1 %vm139_vm7, %v419_v0 }
 0x435   :  { %v310_v2 = vpop.f32.mrf.mxu1 }
 0x436   :  { %v313_v3 = vadd.f32 %v310_v2, %v129_v1 }
 0x438   :  { %420 = vtanh.f32 %v313_v3 }
 0x43e   :  { %v421_v4 = vpop.eup %420 }
 0x43f   :  { %399 = vmatmul.msk.f32.vlgmr.msra.gmra.mxu2 %vm139_vm7, %v421_v4 }
 0x4c2   :  { %v335_v10 = vpop.f32.mrf.mxu2 }
 0x4c3   :  { %v338_v11 = vadd.f32 %v335_v10, %v132_v9 }
 0x4c5   :  { %422 = vtanh.f32 %v338_v11 }
 0x4cb   :  { %v423_v12 = vpop.eup %422 }
 0x4cc   :  { %400 = vmatmul.msk.f32.vlgmr.msra.gmra.mxu3 %vm139_vm7, %v423_v12 }
 0x54f   :  { %v368_v14 = vpop.f32.mrf.mxu3 }
 0x550   :  { %v369_v15 = vadd.f32 %v407_v13, %v368_v14 }
 0x552   :  { %372 = vst.msk [vmem:[%s602_s5] sm:$0xff] %vm371_vm9, %v369_v15 }

</bundles_post_ra>
